<compile_context>
chip_gen: v7x
topology: tpu7x:2x2x1
jax: 0.10.0
libtpu: 0.0.40
codegen_flags: <defaults>
</compile_context>

<pallas_src>
import functools

import numpy as np
import jax
import jax.numpy as jnp
from jax.experimental import pallas as pl
from jax.experimental.pallas import tpu as pltpu

LOGDEV_MIN, LOGDEV_MAX = -20.0, 2.0


def _actor_kernel(x_ref, w1_ref, b1_ref, w2_ref, b2_ref, w3_ref, b3_ref,
                  out_ref, *, action_dim, matmul_dtype):
    """One batch tile of Actor.forward. All refs live in VMEM; weights/biases
    are grid-invariant (single-resident across batch tiles)."""
    mm = matmul_dtype

    x = x_ref[...]                                               # (TB, D_pad) f32

    # fc1 -> ReLU  (MXU matmul with f32 accumulation, f32 elementwise)
    h1 = jnp.dot(x.astype(mm), w1_ref[...].astype(mm),
                 preferred_element_type=jnp.float32) + b1_ref[...]
    h1 = jnp.maximum(h1, 0.0)

    # fc2 -> ReLU
    h2 = jnp.dot(h1.astype(mm), w2_ref[...].astype(mm),
                 preferred_element_type=jnp.float32) + b2_ref[...]
    h2 = jnp.maximum(h2, 0.0)

    # fc_mean_logdev
    temp = jnp.dot(h2.astype(mm), w3_ref[...].astype(mm),
                   preferred_element_type=jnp.float32) + b3_ref[...]   # (TB, 2A)

    # Single lane-dense output: lanes < A carry mean (passthrough), lanes >= A
    # carry logdev (clamped).  Avoids non-aligned lane slices and a second
    # narrow masked store.
    lane = jax.lax.broadcasted_iota(jnp.int32, temp.shape, dimension=1)
    out_ref[...] = jnp.where(lane >= action_dim,
                             jnp.clip(temp, LOGDEV_MIN, LOGDEV_MAX),
                             temp)


@functools.partial(jax.jit,
                   static_argnames=("action_dim", "block_b", "matmul_dtype"))
def actor_forward(x, params, *, action_dim, block_b=256,
                  matmul_dtype=jnp.float32):
    """x: (B, obs_dim) f32, params from prepare_actor_params.
    Returns (mean, logdev), each (B, action_dim) f32."""
    b, d_obs = x.shape
    d_pad, hidden = params["w1"].shape        # fc1 weights pre-padded to D_pad
    two_a = params["w3"].shape[1]

    # Zero-pad the contraction dim to the pre-padded weight rows (weights were
    # padded once at prep time; this is the only per-call layout op).
    if d_obs != d_pad:
        x = jnp.pad(x, ((0, 0), (0, d_pad - d_obs)))

    # Batch tiling: single block for small B, 1-D grid over B otherwise.
    tb = b if b <= block_b else block_b
    b_pad = -(-b // tb) * tb
    if b_pad != b:
        x = jnp.pad(x, ((0, b_pad - b), (0, 0)))

    kernel = functools.partial(_actor_kernel, action_dim=action_dim,
                               matmul_dtype=matmul_dtype)

    def inv(shape):                            # grid-invariant operand
        return pl.BlockSpec(shape, lambda i: (0, 0))

    out = pl.pallas_call(
        kernel,
        out_shape=jax.ShapeDtypeStruct((b_pad, two_a), jnp.float32),
        grid=(b_pad // tb,),
        in_specs=[
            pl.BlockSpec((tb, d_pad), lambda i: (i, 0)),   # x: tiled over B
            inv((d_pad, hidden)),  inv((1, hidden)),       # fc1
            inv((hidden, hidden)), inv((1, hidden)),       # fc2
            inv((hidden, two_a)),  inv((1, two_a)),        # fc_mean_logdev
        ],
        out_specs=pl.BlockSpec((tb, two_a), lambda i: (i, 0)),
        compiler_params=pltpu.CompilerParams(
            dimension_semantics=("parallel",)),            # both TCs on v7x
    )(x, params["w1"], params["b1"], params["w2"], params["b2"],
      params["w3"], params["b3"])

    mean = out[:b, :action_dim]
    logdev = out[:b, action_dim:]
    return mean, logdev


# --------------------------------------------------------------------------
# Parameter construction / one-time layout prep / pure-JAX reference
# --------------------------------------------------------------------------
def init_actor_params(key, obs_dim, action_dim, hidden):
    """PyTorch-layout params (layer_init: xavier_uniform weights, bias=0.1)."""
    ks = jax.random.split(key, 3)

    def xavier(k, fan_out, fan_in):
        bound = np.sqrt(6.0 / (fan_in + fan_out))
        return jax.random.uniform(k, (fan_out, fan_in), jnp.float32,
                                  minval=-bound, maxval=bound)

    return {
        "w1": xavier(ks[0], hidden, obs_dim),          # (H, obs)
        "b1": jnp.full((hidden,), 0.1, jnp.float32),
        "w2": xavier(ks[1], hidden, hidden),           # (H, H)
        "b2": jnp.full((hidden,), 0.1, jnp.float32),
        "w3": xavier(ks[2], 2 * action_dim, hidden),   # (2A, H)
        "b3": jnp.full((2 * action_dim,), 0.1, jnp.float32),
    }


def prepare_actor_params(torch_params, obs_dim):
    """One-time: transpose weights to (in, out), zero-pad the fc1 contraction
    dim to a multiple of 8 sublanes, reshape biases to (1, N) rows."""
    d_pad = -(-obs_dim // 8) * 8
    w1t = torch_params["w1"].T                                     # (obs, H)
    w1p = jnp.pad(w1t, ((0, d_pad - obs_dim), (0, 0)))             # (D_pad, H)
    hidden = w1p.shape[1]
    two_a = torch_params["w3"].shape[0]
    return {
        "w1": w1p,
        "b1": torch_params["b1"].reshape(1, hidden),
        "w2": torch_params["w2"].T,                                # (H, H)
        "b2": torch_params["b2"].reshape(1, hidden),
        "w3": torch_params["w3"].T,                                # (H, 2A)
        "b3": torch_params["b3"].reshape(1, two_a),
    }


def actor_reference(x, torch_params, action_dim):
    """Pure-JAX reference mirroring PyTorch Actor.forward."""
    h1 = jnp.maximum(x @ torch_params["w1"].T + torch_params["b1"], 0.0)
    h2 = jnp.maximum(h1 @ torch_params["w2"].T + torch_params["b2"], 0.0)
    temp = h2 @ torch_params["w3"].T + torch_params["b3"]
    mean = temp[:, :action_dim]
    logdev = jnp.clip(temp[:, action_dim:], LOGDEV_MIN, LOGDEV_MAX)
    return mean, logdev


if __name__ == "__main__":
    OBS_DIM, ACTION_DIM, HIDDEN = 22, 4, 32     # obs_shape=[22,1], action_shape=[4,1]

    key = jax.random.PRNGKey(0)
    k_params, k_x_small, k_x_big = jax.random.split(key, 3)

    torch_params = init_actor_params(k_params, OBS_DIM, ACTION_DIM, HIDDEN)
    params = prepare_actor_params(torch_params, OBS_DIM)   # one-time layout prep

    # --- small batch matching the PyTorch spec shapes (B=2) ------------------
    x_small = jax.random.normal(k_x_small, (2, OBS_DIM), jnp.float32)
    mean, logdev = actor_forward(x_small, params, action_dim=ACTION_DIM)
    mean, logdev = jax.block_until_ready((mean, logdev))

    ref_mean, ref_logdev = actor_reference(x_small, torch_params, ACTION_DIM)
    np.testing.assert_allclose(np.asarray(mean), np.asarray(ref_mean),
                               rtol=1e-5, atol=1e-5)
    np.testing.assert_allclose(np.asarray(logdev), np.asarray(ref_logdev),
                               rtol=1e-5, atol=1e-5)
    assert mean.shape == (2, ACTION_DIM) and logdev.shape == (2, ACTION_DIM)

    # --- batched path: 1-D grid over B, weights single-resident --------------
    x_big = jax.random.normal(k_x_big, (256, OBS_DIM), jnp.float32)
    ref_mean_b, ref_logdev_b = actor_reference(x_big, torch_params, ACTION_DIM)

    mean_b, logdev_b = actor_forward(x_big, params, action_dim=ACTION_DIM,
                                     block_b=128)
    mean_b, logdev_b = jax.block_until_ready((mean_b, logdev_b))
    np.testing.assert_allclose(np.asarray(mean_b), np.asarray(ref_mean_b),
                               rtol=1e-5, atol=1e-5)
    np.testing.assert_allclose(np.asarray(logdev_b), np.asarray(ref_logdev_b),
                               rtol=1e-5, atol=1e-5)

    # --- bf16 MXU operands (v6e/v7x), f32 accumulation + f32 elementwise -----
    mean_bf, logdev_bf = actor_forward(x_big, params, action_dim=ACTION_DIM,
                                       block_b=128, matmul_dtype=jnp.bfloat16)
    mean_bf, logdev_bf = jax.block_until_ready((mean_bf, logdev_bf))
    np.testing.assert_allclose(np.asarray(mean_bf), np.asarray(ref_mean_b),
                               rtol=5e-2, atol=5e-2)
    np.testing.assert_allclose(np.asarray(logdev_bf), np.asarray(ref_logdev_b),
                               rtol=5e-2, atol=5e-2)

    print("KERNEL_OK")
</pallas_src>

<mosaic_0001>
module attributes {stable_mosaic.version = 11 : i64} {
  func.func @_actor_kernel(%arg0: i32, %arg1: memref<2x24xf32, #tpu.memory_space<vmem>>, %arg2: memref<24x32xf32, #tpu.memory_space<vmem>>, %arg3: memref<1x32xf32, #tpu.memory_space<vmem>>, %arg4: memref<32x32xf32, #tpu.memory_space<vmem>>, %arg5: memref<1x32xf32, #tpu.memory_space<vmem>>, %arg6: memref<32x8xf32, #tpu.memory_space<vmem>>, %arg7: memref<1x8xf32, #tpu.memory_space<vmem>>, %arg8: memref<2x8xf32, #tpu.memory_space<vmem>>) attributes {dimension_semantics = [#tpu.dimension_semantics<parallel>], iteration_bounds = array<i64: 1>, scalar_prefetch = 0 : i64, scratch_operands = 0 : i64, tpu.core_type = #tpu.core_type<tc>, window_params = [{transform_indices = @transform_0, window_bounds = array<i64: 2, 24>}, {pipeline_mode = #tpu.pipeline_mode<synchronous>, transform_indices = @transform_1, window_bounds = array<i64: 24, 32>}, {pipeline_mode = #tpu.pipeline_mode<synchronous>, transform_indices = @transform_2, window_bounds = array<i64: 1, 32>}, {pipeline_mode = #tpu.pipeline_mode<synchronous>, transform_indices = @transform_3, window_bounds = array<i64: 32, 32>}, {pipeline_mode = #tpu.pipeline_mode<synchronous>, transform_indices = @transform_4, window_bounds = array<i64: 1, 32>}, {pipeline_mode = #tpu.pipeline_mode<synchronous>, transform_indices = @transform_5, window_bounds = array<i64: 32, 8>}, {pipeline_mode = #tpu.pipeline_mode<synchronous>, transform_indices = @transform_6, window_bounds = array<i64: 1, 8>}, {transform_indices = @transform_7, window_bounds = array<i64: 2, 8>}]} {
    %c0 = arith.constant 0 : index
    %c0_0 = arith.constant 0 : index
    %0 = vector.load %arg1[%c0, %c0_0] : memref<2x24xf32, #tpu.memory_space<vmem>>, vector<2x24xf32>
    %c0_1 = arith.constant 0 : index
    %c0_2 = arith.constant 0 : index
    %1 = vector.load %arg2[%c0_1, %c0_2] : memref<24x32xf32, #tpu.memory_space<vmem>>, vector<24x32xf32>
    %cst = arith.constant dense<0.000000e+00> : vector<2x32xf32>
    %2 = tpu.matmul %0, %1, %cst {dimension_numbers = #tpu.dot_dimension_numbers<[1], [0], [0], [1], [0, 0, 1, 1], [], []>} : vector<2x24xf32>, vector<24x32xf32>, vector<2x32xf32> -> vector<2x32xf32>
    %c0_3 = arith.constant 0 : index
    %c0_4 = arith.constant 0 : index
    %3 = vector.load %arg3[%c0_3, %c0_4] : memref<1x32xf32, #tpu.memory_space<vmem>>, vector<1x32xf32>
    %4 = vector.broadcast %3 : vector<1x32xf32> to vector<2x32xf32>
    %5 = arith.addf %2, %4 : vector<2x32xf32>
    %cst_5 = arith.constant 0.000000e+00 : f32
    %6 = vector.broadcast %cst_5 : f32 to vector<2x32xf32>
    %7 = arith.maximumf %5, %6 : vector<2x32xf32>
    %c0_6 = arith.constant 0 : index
    %c0_7 = arith.constant 0 : index
    %8 = vector.load %arg4[%c0_6, %c0_7] : memref<32x32xf32, #tpu.memory_space<vmem>>, vector<32x32xf32>
    %cst_8 = arith.constant dense<0.000000e+00> : vector<2x32xf32>
    %9 = tpu.matmul %7, %8, %cst_8 {dimension_numbers = #tpu.dot_dimension_numbers<[1], [0], [0], [1], [0, 0, 1, 1], [], []>} : vector<2x32xf32>, vector<32x32xf32>, vector<2x32xf32> -> vector<2x32xf32>
    %c0_9 = arith.constant 0 : index
    %c0_10 = arith.constant 0 : index
    %10 = vector.load %arg5[%c0_9, %c0_10] : memref<1x32xf32, #tpu.memory_space<vmem>>, vector<1x32xf32>
    %11 = vector.broadcast %10 : vector<1x32xf32> to vector<2x32xf32>
    %12 = arith.addf %9, %11 : vector<2x32xf32>
    %cst_11 = arith.constant 0.000000e+00 : f32
    %13 = vector.broadcast %cst_11 : f32 to vector<2x32xf32>
    %14 = arith.maximumf %12, %13 : vector<2x32xf32>
    %c0_12 = arith.constant 0 : index
    %c0_13 = arith.constant 0 : index
    %15 = vector.load %arg6[%c0_12, %c0_13] : memref<32x8xf32, #tpu.memory_space<vmem>>, vector<32x8xf32>
    %cst_14 = arith.constant dense<0.000000e+00> : vector<2x8xf32>
    %16 = tpu.matmul %14, %15, %cst_14 {dimension_numbers = #tpu.dot_dimension_numbers<[1], [0], [0], [1], [0, 0, 1, 1], [], []>} : vector<2x32xf32>, vector<32x8xf32>, vector<2x8xf32> -> vector<2x8xf32>
    %c0_15 = arith.constant 0 : index
    %c0_16 = arith.constant 0 : index
    %17 = vector.load %arg7[%c0_15, %c0_16] : memref<1x8xf32, #tpu.memory_space<vmem>>, vector<1x8xf32>
    %18 = vector.broadcast %17 : vector<1x8xf32> to vector<2x8xf32>
    %19 = arith.addf %16, %18 : vector<2x8xf32>
    %20 = tpu.iota {dimensions = array<i32: 1>} : vector<2x8xi32>
    %c4_i32 = arith.constant 4 : i32
    %21 = vector.broadcast %c4_i32 : i32 to vector<2x8xi32>
    %22 = arith.cmpi sge, %20, %21 : vector<2x8xi32>
    %cst_17 = arith.constant -2.000000e+01 : f32
    %cst_18 = arith.constant 2.000000e+00 : f32
    %23 = vector.broadcast %cst_17 : f32 to vector<2x8xf32>
    %24 = arith.maximumf %23, %19 : vector<2x8xf32>
    %25 = vector.broadcast %cst_18 : f32 to vector<2x8xf32>
    %26 = arith.minimumf %25, %24 : vector<2x8xf32>
    %27 = arith.select %22, %26, %19 : vector<2x8xi1>, vector<2x8xf32>
    %c0_19 = arith.constant 0 : index
    %c0_20 = arith.constant 0 : index
    %28 = vector.load %arg8[%c0_19, %c0_20] : memref<2x8xf32, #tpu.memory_space<vmem>>, vector<2x8xf32>
    tpu.vector_store %arg8[%c0_19, %c0_20], %27 {strides = array<i32>} : memref<2x8xf32, #tpu.memory_space<vmem>>, vector<2x8xf32>,
    return
  }
  func.func @transform_0(%arg0: i32) -> (i32, i32) {
    %c0_i32 = arith.constant 0 : i32
    %c0_i32_0 = arith.constant 0 : i32
    return %arg0, %c0_i32 : i32, i32
  }
  func.func @transform_1(%arg0: i32) -> (i32, i32) {
    %c0_i32 = arith.constant 0 : i32
    %c0_i32_0 = arith.constant 0 : i32
    %c0_i32_1 = arith.constant 0 : i32
    return %c0_i32, %c0_i32_0 : i32, i32
  }
  func.func @transform_2(%arg0: i32) -> (i32, i32) {
    %c0_i32 = arith.constant 0 : i32
    %c0_i32_0 = arith.constant 0 : i32
    %c0_i32_1 = arith.constant 0 : i32
    return %c0_i32, %c0_i32_0 : i32, i32
  }
  func.func @transform_3(%arg0: i32) -> (i32, i32) {
    %c0_i32 = arith.constant 0 : i32
    %c0_i32_0 = arith.constant 0 : i32
    %c0_i32_1 = arith.constant 0 : i32
    return %c0_i32, %c0_i32_0 : i32, i32
  }
  func.func @transform_4(%arg0: i32) -> (i32, i32) {
    %c0_i32 = arith.constant 0 : i32
    %c0_i32_0 = arith.constant 0 : i32
    %c0_i32_1 = arith.constant 0 : i32
    return %c0_i32, %c0_i32_0 : i32, i32
  }
  func.func @transform_5(%arg0: i32) -> (i32, i32) {
    %c0_i32 = arith.constant 0 : i32
    %c0_i32_0 = arith.constant 0 : i32
    %c0_i32_1 = arith.constant 0 : i32
    return %c0_i32, %c0_i32_0 : i32, i32
  }
  func.func @transform_6(%arg0: i32) -> (i32, i32) {
    %c0_i32 = arith.constant 0 : i32
    %c0_i32_0 = arith.constant 0 : i32
    %c0_i32_1 = arith.constant 0 : i32
    return %c0_i32, %c0_i32_0 : i32, i32
  }
  func.func @transform_7(%arg0: i32) -> (i32, i32) {
    %c0_i32 = arith.constant 0 : i32
    %c0_i32_0 = arith.constant 0 : i32
    return %arg0, %c0_i32 : i32, i32
  }
}

</mosaic_0001>

<bundles_post_ra>
// kernel: actor_forward.1
= control target key start
LH: loop header
LB: loop body
LE: loop exit
PB: predicated region body
PF: predicated region fallthrough
CT: control target
= control target key end

     0   :  { %v363_v0 = vmov 0.0|0.0   ;;  %vm364_vm0 = vmmov 0   ;;  %v365_v3 = vmov 0.0   ;;  %vm37_vm1 = vcmask 195584   ;;  %s457_s1 = inlined_call_operand.vmem [shape: f32[24,32], index: 1, kind: input, shape index: {}]   ;;  %s458_s3 = inlined_call_operand.vmem [shape: f32[32,32], index: 3, kind: input, shape index: {}]   ;;  %s459_s0 = inlined_call_operand.vmem [shape: f32[2,24], index: 0, kind: input, shape index: {}]   ;;  %s460_s5 = inlined_call_operand.vmem [shape: f32[32,8], index: 5, kind: input, shape index: {}]   ;;  %s461_s2 = inlined_call_operand.vmem [shape: f32[1,32], index: 2, kind: input, shape index: {}]   ;;  %s462_s4 = inlined_call_operand.vmem [shape: f32[1,32], index: 4, kind: input, shape index: {}]   ;;  %s463_s6 = inlined_call_operand.vmem [shape: f32[1,8], index: 6, kind: input, shape index: {}]   ;;  %s464_s7 = inlined_call_operand.vmem [shape: f32[2,8], index: 7, kind: output, shape index: {}]  }
   0x1   :  { %345 = vmatprep.subr.bf16.mxu0 %v363_v0  ;;  %v27_v1 = vld [vmem:[%s457_s1] sm:$0xff]  ;;  %v28_v2 = vld [vmem:[%s457_s1 + $0x8] sm:$0xff]  ;;  %320 = vmatprep.mubr.msk.f32.mxu0 %vm364_vm0, %v365_v3  ;;  %v29_v8 = vld [vmem:[%s457_s1 + $0x10] sm:$0xff]  ;;  %vm123_vm2 = vcmask 261120   ;;  %v282_v29 = vlaneseq  ;;  %vm288_vm4 = vcmask 58368  }
   0x2   :  { %v346_v4 = vpack.c.bf16 %v28_v2, %v27_v1  ;;  %348 = vmatprep.subr.bf16.mxu1 %v363_v0  ;;  %v112_v5 = vld [vmem:[%s458_s3] sm:$0xff]  ;;  %v113_v6 = vld [vmem:[%s458_s3 + $0x8] sm:$0xff]  ;;  %331 = vmatprep.mubr.msk.f32.mxu1 %vm364_vm0, %v365_v3  ;;  %v114_v10 = vld [vmem:[%s458_s3 + $0x10] sm:$0xff] }
   0x3   :  { %v349_v7 = vpack.c.bf16 %v113_v6, %v112_v5  ;;  %v26_v9 = vld [vmem:[%s459_s0] sm:$0x3]  ;;  %v115_v11 = vld [vmem:[%s458_s3 + $0x18] sm:$0xff]  ;;  %v199_v14 = vld [vmem:[%s460_s5 + $0x8] sm:$0xff]  ;;  %v283_v32 = vand.u32 127, %v282_v29 }
   0x4   :  { %347 = vmatpush3.bf16.msra.mxu0 %v346_v4  ;;  %v352_v12 = vpack.c.bf16 %v115_v11, %v114_v10  ;;  %v198_v13 = vld [vmem:[%s460_s5] sm:$0xff]  ;;  %v200_v21 = vld [vmem:[%s460_s5 + $0x10] sm:$0xff]  ;;  %v201_v22 = vld [vmem:[%s460_s5 + $0x18] sm:$0xff] }
   0x5   :  { %318 = vmatprep.subr.mxu0 %v365_v3  ;;  %350 = vmatpush3.bf16.msra.mxu1 %v349_v7  ;;  %v355_v15 = vpack.c.bf16 %v199_v14, %v198_v13  ;;  %v294_v16 = vld [vmem:[%s461_s2] ss:$0 sm:$0xff]  ;;  %v358_v23 = vpack.c.bf16 %v201_v22, %v200_v21  ;;  %vm284_vm3 = vcmp.ge.s32.totalorder %v283_v32, 4 }
   0x6   :  { %351 = vmatprep.subr.bf16.mxu1 %v363_v0  ;;  %v296_v24 = vld [vmem:[%s462_s4] ss:$0 sm:$0xff] }
   0x7   :  { %v298_v30 = vld [vmem:[%s463_s6] ss:$0 sm:$0xff] }
   0x8   :  { %319 = vmatpush3.msra.mxu0 %v29_v8 }
   0x9   :  { %321 = vmatmul.mubr.msk.f32.vlgmr.msra.gmra.mrb[0].mxu0 %vm37_vm1, %v26_v9  ;;  %354 = vmatprep.subr.bf16.mxu0 %v363_v0 }
   0xa   :  { %342 = vmatprep.mubr.msk.f32.mxu0 %vm364_vm0, %v365_v3  ;;  %353 = vmatpush3.bf16.msra.mxu1 %v352_v12 }
   0xb   :  { %356 = vmatpush3.bf16.msra.mxu0 %v355_v15 }
   0xc   :  { %357 = vmatprep.subr.bf16.mxu0 %v363_v0 }
   0xf   :  { %359 = vmatpush3.bf16.msra.mxu0 %v358_v23 }
  0xdc   :  { %v107_v17 = vpop.f32.mrb[0].mxu0 }
  0xdd   :  { %v108_v18 = vadd.f32 %v294_v16, %v107_v17  ;;  %v322_v19 = vpop.f32.mrb[1].mxu0 }
  0xdf   :  { %v111_v20 = vmax.f32 %v108_v18, 0.0 }
  0xe1   :  { %332 = vmatmul.mubr.msk.f32.vlgmr.msra.gmra.mrb[0].mxu1 %vm123_vm2, %v111_v20 }
 0x1b4   :  { %v193_v25 = vpop.f32.mrb[0].mxu1 }
 0x1b5   :  { %v194_v26 = vadd.f32 %v296_v24, %v193_v25  ;;  %v333_v27 = vpop.f32.mrb[1].mxu1 }
 0x1b7   :  { %v197_v28 = vmax.f32 %v194_v26, 0.0 }
 0x1b9   :  { %343 = vmatmul.mubr.msk.f32.vlgmr.msra.gmra.mrb[2].mxu0 %vm123_vm2, %v197_v28 }
 0x28c   :  { %v278_v31 = vpop.f32.mrb[2].mxu0 }
 0x28d   :  { %v279_v33 = vadd.f32 %v298_v30, %v278_v31  ;;  %v344_v34 = vpop.f32.mrb[3].mxu0 }
 0x28f   :  { %v285_v35 = vmax.f32 %v279_v33, -20.0 }
 0x291   :  { %v286_v36 = vmin.f32 %v285_v35, 2.0 }
 0x293   :  { %v287_v37 = vsel %vm284_vm3, %v286_v36, %v279_v33 }
 0x294   :  { %289 = vst.msk [vmem:[%s464_s7] sm:$0x3] %vm288_vm4, %v287_v37 }

</bundles_post_ra>
